<compile_context>
chip_gen: v5e
topology: v5e:2x2
jax: 0.10.0
libtpu: 0.0.40
codegen_flags: <defaults>
</compile_context>

<pallas_src>
import functools

import jax
import jax.numpy as jnp
from jax.experimental import pallas as pl
from jax.experimental.pallas import tpu as pltpu

_EPS = 1e-5                               # nn.InstanceNorm2d default eps
_VMEM_LIMIT_BYTES = 48 * 1024 * 1024      # < v7x 64 MiB physical; fine on v5e/v6e
_TARGET_BLOCK_BYTES = 4 * 1024 * 1024     # ~4 MiB DMA per block (roofline knee)
_MAX_FUSED_BLOCK_BYTES = 6 * 1024 * 1024  # above this, switch to hw-tiled path


def _sublane_multiple(itemsize):
    return {4: 8, 2: 16, 1: 32}.get(itemsize, 8)


def _choose_block_rows(nc, hw, itemsize):
    """Row-block size targeting ~_TARGET_BLOCK_BYTES per DMA (sublane aligned)."""
    sub = _sublane_multiple(itemsize)
    budget_rows = max(1, _TARGET_BLOCK_BYTES // max(1, hw * itemsize))
    if nc < 4 * sub or budget_rows >= nc:
        # tiny problem: one full-dim block (exempt from the 8-sublane rule) or
        # the largest aligned block that still respects the byte budget.
        if budget_rows >= nc:
            return nc
        return max(sub, (min(budget_rows, nc) // sub) * sub)
    # keep >= 4 grid steps (>= 2 per v7x TensorCore under megacore sharding)
    quarter = max(sub, ((nc // 4) // sub) * sub)
    rows = min(budget_rows, quarter)
    return max(sub, (rows // sub) * sub)


# --------------------------------------------------------------------------- #
# Fused path: whole hw row fits in one VMEM block.
# --------------------------------------------------------------------------- #
def _fused_kernel(x_ref, gb_ref, o_ref, *, inv_hw):
    # x_ref/o_ref: (block_rows, hw); gb_ref: (block_rows, 2) f32 [gamma, beta].
    x = x_ref[...].astype(jnp.float32)
    gb = gb_ref[...]
    g = gb[:, 0:1]
    b = gb[:, 1:2]
    mean = jnp.sum(x, axis=-1, keepdims=True) * inv_hw
    d = x - mean
    var = jnp.sum(d * d, axis=-1, keepdims=True) * inv_hw   # biased (PyTorch)
    inv = jax.lax.rsqrt(var + _EPS)
    scale = inv * g
    shift = b - mean * scale
    o_ref[...] = (x * scale + shift).astype(o_ref.dtype)


def _instance_norm_fused(x2, gb, nc, hw, itemsize):
    block_rows = _choose_block_rows(nc, hw, itemsize)
    grid = (pl.cdiv(nc, block_rows),)
    kernel = functools.partial(_fused_kernel, inv_hw=1.0 / float(hw))
    return pl.pallas_call(
        kernel,
        out_shape=jax.ShapeDtypeStruct((nc, hw), x2.dtype),
        grid_spec=pltpu.PrefetchScalarGridSpec(
            num_scalar_prefetch=0,
            grid=grid,
            in_specs=[
                pl.BlockSpec((block_rows, hw), lambda i: (i, 0)),
                pl.BlockSpec((block_rows, 2), lambda i: (i, 0)),
            ],
            out_specs=pl.BlockSpec((block_rows, hw), lambda i: (i, 0)),
        ),
        compiler_params=pltpu.CompilerParams(
            dimension_semantics=("parallel",),
            vmem_limit_bytes=_VMEM_LIMIT_BYTES,
        ),
    )(x2, gb)


# --------------------------------------------------------------------------- #
# Large-hw path: tile the reduction axis ('arbitrary'), then a normalize pass.
# --------------------------------------------------------------------------- #
def _stats_kernel(x_ref, gb_ref, coef_ref, s_ref, ss_ref, *, hw, hw_tile, inv_hw):
    k = pl.program_id(1)

    @pl.when(k == 0)
    def _():
        s_ref[...] = jnp.zeros_like(s_ref)
        ss_ref[...] = jnp.zeros_like(ss_ref)

    x = x_ref[...].astype(jnp.float32)
    lane = jax.lax.broadcasted_iota(jnp.int32, x.shape, 1)
    x = jnp.where(k * hw_tile + lane < hw, x, 0.0)        # mask hw tail
    s_ref[...] += jnp.sum(x, axis=-1, keepdims=True)
    ss_ref[...] += jnp.sum(x * x, axis=-1, keepdims=True)

    @pl.when(k == pl.num_programs(1) - 1)
    def _():
        mean = s_ref[...] * inv_hw
        var = jnp.maximum(ss_ref[...] * inv_hw - mean * mean, 0.0)
        inv = jax.lax.rsqrt(var + _EPS)
        gb = gb_ref[...]
        scale = inv * gb[:, 0:1]
        shift = gb[:, 1:2] - mean * scale
        coef_ref[...] = jnp.concatenate([scale, shift], axis=-1)


def _apply_kernel(x_ref, coef_ref, o_ref):
    x = x_ref[...].astype(jnp.float32)
    coef = coef_ref[...]
    o_ref[...] = (x * coef[:, 0:1] + coef[:, 1:2]).astype(o_ref.dtype)


def _instance_norm_tiled(x2, gb, nc, hw, itemsize):
    sub = _sublane_multiple(itemsize)
    rows = min(nc, sub)
    hw_tile = max(128, (_TARGET_BLOCK_BYTES // max(1, rows * itemsize) // 128) * 128)
    grid = (pl.cdiv(nc, rows), pl.cdiv(hw, hw_tile))

    coef = pl.pallas_call(
        functools.partial(_stats_kernel, hw=hw, hw_tile=hw_tile,
                          inv_hw=1.0 / float(hw)),
        out_shape=jax.ShapeDtypeStruct((nc, 2), jnp.float32),
        grid_spec=pltpu.PrefetchScalarGridSpec(
            num_scalar_prefetch=0,
            grid=grid,
            in_specs=[
                pl.BlockSpec((rows, hw_tile), lambda r, k: (r, k)),
                pl.BlockSpec((rows, 2), lambda r, k: (r, 0)),
            ],
            out_specs=pl.BlockSpec((rows, 2), lambda r, k: (r, 0)),
            scratch_shapes=[pltpu.VMEM((rows, 1), jnp.float32),
                            pltpu.VMEM((rows, 1), jnp.float32)],
        ),
        compiler_params=pltpu.CompilerParams(
            dimension_semantics=("parallel", "arbitrary"),
            vmem_limit_bytes=_VMEM_LIMIT_BYTES,
        ),
    )(x2, gb)

    return pl.pallas_call(
        _apply_kernel,
        out_shape=jax.ShapeDtypeStruct((nc, hw), x2.dtype),
        grid_spec=pltpu.PrefetchScalarGridSpec(
            num_scalar_prefetch=0,
            grid=grid,
            in_specs=[
                pl.BlockSpec((rows, hw_tile), lambda r, k: (r, k)),
                pl.BlockSpec((rows, 2), lambda r, k: (r, 0)),
            ],
            out_specs=pl.BlockSpec((rows, hw_tile), lambda r, k: (r, k)),
        ),
        compiler_params=pltpu.CompilerParams(
            dimension_semantics=("parallel", "parallel"),
            vmem_limit_bytes=_VMEM_LIMIT_BYTES,
        ),
    )(x2, coef)


# --------------------------------------------------------------------------- #
# Public API
# --------------------------------------------------------------------------- #
@jax.jit
def instance_norm2d(x, weight, bias):
    """InstanceNorm2d(affine=True) on NCHW input via Pallas (no host pad/crop)."""
    n, c, h, w = x.shape
    nc, hw = n * c, h * w
    itemsize = jnp.dtype(x.dtype).itemsize

    x2 = x.reshape(nc, hw)
    # Per-row (n, c) affine params packed as (nc, 2) f32, blocked with the grid.
    gb = jnp.stack([jnp.tile(weight.astype(jnp.float32), n),
                    jnp.tile(bias.astype(jnp.float32), n)], axis=-1)

    sub = _sublane_multiple(itemsize)
    min_block_bytes = min(nc, sub) * hw * itemsize
    if min_block_bytes <= _MAX_FUSED_BLOCK_BYTES:
        out2 = _instance_norm_fused(x2, gb, nc, hw, itemsize)
    else:
        out2 = _instance_norm_tiled(x2, gb, nc, hw, itemsize)
    return out2.reshape(n, c, h, w)


def pre_norm_forward(x, weight, bias, fn=lambda y: y):
    """PreNorm.forward: fn(InstanceNorm2d(x))."""
    # TODO(synk): fuse a pointwise `fn` into the Pallas kernel to avoid an
    # extra HBM round trip of the normalized tensor.
    return fn(instance_norm2d(x, weight, bias))


def _reference(x, weight, bias):
    xf = x.astype(jnp.float32)
    mean = jnp.mean(xf, axis=(2, 3), keepdims=True)
    var = jnp.mean((xf - mean) ** 2, axis=(2, 3), keepdims=True)
    y = (xf - mean) / jnp.sqrt(var + _EPS)
    return (y * weight[None, :, None, None] + bias[None, :, None, None]).astype(x.dtype)


if __name__ == "__main__":
    key = jax.random.PRNGKey(0)
    kx, kw, kb, kx2 = jax.random.split(key, 4)

    N, C, H, W = 2, 4, 16, 16
    x = jax.random.normal(kx, (N, C, H, W), dtype=jnp.float32)
    # PyTorch default init is weight=1, bias=0; perturb so the affine path is
    # actually exercised.
    weight = 1.0 + 0.1 * jax.random.normal(kw, (C,), dtype=jnp.float32)
    bias = 0.1 * jax.random.normal(kb, (C,), dtype=jnp.float32)

    out = pre_norm_forward(x, weight, bias)
    out = jax.block_until_ready(out)
    ref = _reference(x, weight, bias)
    assert jnp.allclose(out, ref, atol=1e-4, rtol=1e-4), "mismatch vs reference"

    # Odd (non-128-multiple) spatial size: exercises the no-pad boundary logic.
    N2, C2, H2, W2 = 2, 3, 10, 12
    x_odd = jax.random.normal(kx2, (N2, C2, H2, W2), dtype=jnp.float32)
    w_odd = 1.0 + 0.1 * jax.random.normal(kw, (C2,), dtype=jnp.float32)
    b_odd = 0.1 * jax.random.normal(kb, (C2,), dtype=jnp.float32)
    out_odd = jax.block_until_ready(pre_norm_forward(x_odd, w_odd, b_odd))
    ref_odd = _reference(x_odd, w_odd, b_odd)
    assert jnp.allclose(out_odd, ref_odd, atol=1e-4, rtol=1e-4), "odd-shape mismatch"

    print("KERNEL_OK")
</pallas_src>

<mosaic_0001>
module attributes {stable_mosaic.version = 11 : i64} {
  func.func @_fused_kernel(%arg0: i32, %arg1: memref<8x256xf32, #tpu.memory_space<vmem>>, %arg2: memref<8x2xf32, #tpu.memory_space<vmem>>, %arg3: memref<8x256xf32, #tpu.memory_space<vmem>>) attributes {dimension_semantics = [#tpu.dimension_semantics<parallel>], iteration_bounds = array<i64: 1>, scalar_prefetch = 0 : i64, scratch_operands = 0 : i64, tpu.core_type = #tpu.core_type<tc>, window_params = [{transform_indices = @transform_0, window_bounds = array<i64: 8, 256>}, {transform_indices = @transform_1, window_bounds = array<i64: 8, 2>}, {transform_indices = @transform_2, window_bounds = array<i64: 8, 256>}]} {
    %c0 = arith.constant 0 : index
    %c0_0 = arith.constant 0 : index
    %0 = vector.load %arg1[%c0, %c0_0] : memref<8x256xf32, #tpu.memory_space<vmem>>, vector<8x256xf32>
    %c0_1 = arith.constant 0 : index
    %c0_2 = arith.constant 0 : index
    %1 = vector.load %arg2[%c0_1, %c0_2] : memref<8x2xf32, #tpu.memory_space<vmem>>, vector<8x2xf32>
    %2 = vector.extract_strided_slice %1 {offsets = [0, 0], sizes = [8, 1], strides = [1, 1]} : vector<8x2xf32> to vector<8x1xf32>
    %3 = vector.extract_strided_slice %1 {offsets = [0, 1], sizes = [8, 1], strides = [1, 1]} : vector<8x2xf32> to vector<8x1xf32>
    %cst = arith.constant dense<0.000000e+00> : vector<8xf32>
    %4 = vector.multi_reduction <add>, %0, %cst [1] : vector<8x256xf32> to vector<8xf32>
    %5 = vector.shape_cast %4 : vector<8xf32> to vector<8x1xf32>
    %cst_3 = arith.constant 3.906250e-03 : f32
    %6 = vector.broadcast %cst_3 : f32 to vector<8x1xf32>
    %7 = arith.mulf %5, %6 : vector<8x1xf32>
    %8 = vector.broadcast %7 : vector<8x1xf32> to vector<8x256xf32>
    %9 = arith.subf %0, %8 : vector<8x256xf32>
    %10 = arith.mulf %9, %9 : vector<8x256xf32>
    %cst_4 = arith.constant dense<0.000000e+00> : vector<8xf32>
    %11 = vector.multi_reduction <add>, %10, %cst_4 [1] : vector<8x256xf32> to vector<8xf32>
    %12 = vector.shape_cast %11 : vector<8xf32> to vector<8x1xf32>
    %cst_5 = arith.constant 3.906250e-03 : f32
    %13 = vector.broadcast %cst_5 : f32 to vector<8x1xf32>
    %14 = arith.mulf %12, %13 : vector<8x1xf32>
    %cst_6 = arith.constant 9.99999974E-6 : f32
    %15 = vector.broadcast %cst_6 : f32 to vector<8x1xf32>
    %16 = arith.addf %14, %15 : vector<8x1xf32>
    %17 = math.rsqrt %16 : vector<8x1xf32>
    %18 = arith.mulf %17, %2 : vector<8x1xf32>
    %19 = arith.mulf %7, %18 : vector<8x1xf32>
    %20 = arith.subf %3, %19 : vector<8x1xf32>
    %21 = vector.broadcast %18 : vector<8x1xf32> to vector<8x256xf32>
    %22 = arith.mulf %0, %21 : vector<8x256xf32>
    %23 = vector.broadcast %20 : vector<8x1xf32> to vector<8x256xf32>
    %24 = arith.addf %22, %23 : vector<8x256xf32>
    %c0_7 = arith.constant 0 : index
    %c0_8 = arith.constant 0 : index
    %25 = vector.load %arg3[%c0_7, %c0_8] : memref<8x256xf32, #tpu.memory_space<vmem>>, vector<8x256xf32>
    tpu.vector_store %arg3[%c0_7, %c0_8], %24 {strides = array<i32>} : memref<8x256xf32, #tpu.memory_space<vmem>>, vector<8x256xf32>,
    return
  }
  func.func @transform_0(%arg0: i32) -> (i32, i32) {
    %c0_i32 = arith.constant 0 : i32
    %c0_i32_0 = arith.constant 0 : i32
    return %arg0, %c0_i32 : i32, i32
  }
  func.func @transform_1(%arg0: i32) -> (i32, i32) {
    %c0_i32 = arith.constant 0 : i32
    %c0_i32_0 = arith.constant 0 : i32
    return %arg0, %c0_i32 : i32, i32
  }
  func.func @transform_2(%arg0: i32) -> (i32, i32) {
    %c0_i32 = arith.constant 0 : i32
    %c0_i32_0 = arith.constant 0 : i32
    return %arg0, %c0_i32 : i32, i32
  }
}

</mosaic_0001>

<bundles_post_ra>
// kernel: tile.18
= control target key start
LH: loop header
LB: loop body
LE: loop exit
PB: predicated region body
PF: predicated region fallthrough
CT: control target
= control target key end

     0   :  { %vm7_vm0 = vcmask 31744   ;;  %vm13_vm1 = vcmask 64544   ;;  %s39_s0 = inlined_call_operand.vmem [shape: f32[2,4], index: 0, kind: input, shape index: {}]   ;;  %s40_s1 = inlined_call_operand.vmem [shape: f32[8,1], index: 1, kind: output, shape index: {}]  }
   0x1   :  { %v4_v0 = vld [vmem:[%s39_s0] sm:$0x3]  ;;  %s22_s0 = smov 4  }
   0x2   :  { %5 = vst [vmem:[#allocation1] sm:$0x3] %v4_v0 }
   0x9   :  { %v10_v1 = vld [vmem:[#allocation1 + $0x1] sm:$0x1]   ;;  %v6_v2 = vld [vmem:[#allocation1] sm:$0x1]  }
   0xa   :  { %11 = vrot.lane.b32.xlu0 %v10_v1, %s22_s0  ;;  %8 = vst.msk [vmem:[#allocation0] sm:$0x1] %vm7_vm0, %v6_v2  }
  0x7c   :  { %v12_v3 = vpop.permute.xlu0 %11  }
  0x7d   :  { %14 = vst.msk [vmem:[#allocation0] sm:$0x1] %vm13_vm1, %v12_v3  }
  0x84   :  { %v17_v4 = vld [vmem:[#allocation0] sm:$0x1] }
  0x85   :  { %20 = vst [vmem:[%s40_s1] sm:$0x1] %v17_v4 }

// kernel: tile.17
= control target key start
LH: loop header
LB: loop body
LE: loop exit
PB: predicated region body
PF: predicated region fallthrough
CT: control target
= control target key end

     0   :  { %s22_s0 = inlined_call_operand.vmem [shape: f32[4], index: 0, kind: input, shape index: {}]   ;;  %s23_s1 = inlined_call_operand.vmem [shape: f32[2,4], index: 1, kind: output, shape index: {}]  }
   0x1   :  { %v4_v0 = vld [vmem:[%s22_s0] ss:$0 sm:$0xff] }
   0x2   :  { %5 = vst [vmem:[%s23_s1] sm:$0x3] %v4_v0 }

// kernel: tile.13
= control target key start
LH: loop header
LB: loop body
LE: loop exit
PB: predicated region body
PF: predicated region fallthrough
CT: control target
= control target key end

     0   :  { %2 = vsyncpa [#allocation1], 0  ;;  %s48_s8 = smov [#allocation0]   ;;  %s65_s0 = inlined_call_operand.hbm [shape: f32[4], index: 0, kind: input, shape index: {}]   ;;  %s66_s1 = inlined_call_operand.vmem [shape: f32[2,4], index: 1, kind: output, shape index: {}]  }
   0x1   :  { %s8_s0 = sshll.u32 %s65_s0, 4  ;;  %s10_s9 = sshll.u32 %s48_s8, 4  ;;  %s9_s0 = int_to_ptr.hbm [resolvable:$true] %s8_s0  ;;  %s11_s9 = int_to_ptr.vmem [resolvable:$true] %s10_s9 }
   0x2   :  { %13 = dma.hbm_to_vmem [thread:$0]  %s9_s0, 16, %s11_s9, [#allocation1]  }
   0x3   :  { %46 = dma.done.wait [#allocation1], 16  }
   0x4   :  { %47 = vsyncadd [#allocation1], 4294967280  ;;  %v18_v0 = vld [vmem:[#allocation0] ss:$0 sm:$0xff] }
   0x5   :  { %19 = vst [vmem:[%s66_s1] sm:$0x3] %v18_v0 }
   0x6   :  { %20 = vsyncpa [#allocation1], 1 }

// kernel: instance_norm2d.1
= control target key start
LH: loop header
LB: loop body
LE: loop exit
PB: predicated region body
PF: predicated region fallthrough
CT: control target
= control target key end

     0   :  { %v72_v10 = vmov 0   ;;  %s73_s14 = smov 1   ;;  %v74_v24 = vmov 1   ;;  %s105_s0 = inlined_call_operand.vmem [shape: f32[8,256], index: 0, kind: input, shape index: {}]   ;;  %s106_s1 = inlined_call_operand.vmem [shape: f32[8,2], index: 1, kind: input, shape index: {}]   ;;  %s107_s2 = inlined_call_operand.vmem [shape: f32[8,256], index: 2, kind: output, shape index: {}]  }
   0x1   :  { %v11_v0 = vld [vmem:[%s105_s0] sm:$0xff]  ;;  %v12_v1 = vld [vmem:[%s105_s0 + $0x8] sm:$0xff]  ;;  %67 = vset.pattern.permute.xlu1 %v72_v10  ;;  %68 = vset.pattern.permute.xlu2 %v74_v24 }
   0x2   :  { %v14_v2 = vadd.f32 %v12_v1, %v11_v0  ;;  %v13_v19 = vld [vmem:[%s106_s1] sm:$0xff]  ;;  %69 = vset.pattern.permute.xlu0 %v74_v24 }
   0x4   :  { %15 = vadd.xlane.f32.xlu0 %v14_v2 }
  0x77   :  { %v16_v3 = vpop.xlane.xlu0 %15 }
  0x78   :  { %v17_v4 = vmul.f32 0.00390625, %v16_v3 }
  0x7a   :  { %v18_v5 = vsub.f32 %v11_v0, %v17_v4  ;;  %v19_v6 = vsub.f32 %v12_v1, %v17_v4 }
  0x7c   :  { %v20_v7 = vmul.f32 %v18_v5, %v18_v5  ;;  %v21_v8 = vmul.f32 %v19_v6, %v19_v6 }
  0x7e   :  { %v22_v9 = vadd.f32 %v21_v8, %v20_v7 }
  0x80   :  { %23 = vadd.xlane.f32.xlu0 %v22_v9 }
  0xf3   :  { %v24_v11 = vpop.xlane.xlu0 %23 }
  0xf4   :  { %v25_v12 = vmul.f32 0.00390625, %v24_v11 }
  0xf6   :  { %v26_v13 = vadd.f32 1e-05, %v25_v12 }
  0xf8   :  { %70 = vrsqrt.f32 %v26_v13  ;;  %vm33_vm1 = vweird.f32 %v26_v13 }
  0xfe   :  { %v71_v14 = vpop.eup %70 }
  0xff   :  { %v28_v15 = vmul.f32 %v71_v14, %v26_v13  ;;  %vm34_vm0 = vweird.f32 %v71_v14 }
 0x100   :  { %vm35_vm2 = vmor %vm33_vm1, %vm34_vm0 }
 0x101   :  { %v29_v16 = vmul.f32 %v71_v14, %v28_v15 }
 0x103   :  { %v30_v17 = vmul.f32 0.5, %v29_v16 }
 0x105   :  { %v31_v18 = vsub.f32 1.5, %v30_v17 }
 0x107   :  { %v32_v20 = vmul.f32 %v71_v14, %v31_v18 }
 0x109   :  { %v36_v21 = vsel %vm35_vm2, %v71_v14, %v32_v20 }
 0x10a   :  { %v37_v22 = vmul.f32 %v36_v21, %v13_v19 }
 0x10c   :  { %v38_v23 = vmul.f32 %v37_v22, %v17_v4 }
 0x10e   :  { %40 = vrot.lane.b32.xlu1 %v38_v23, %s73_s14 }
 0x116   :  { %46 = vperm.xlu1 %67, %v37_v22  }
 0x180   :  { %v41_v25 = vpop.permute.xlu1 %40 }
 0x181   :  { %v43_v26 = vsub.f32 %v13_v19, %v41_v25 }
 0x183   :  { %53 = vperm.xlu2 %68, %v43_v26  }
 0x188   :  { %v47_v27 = vpop.permute.xlu1 %46 }
 0x189   :  { %v49_v28 = vmul.f32 %v47_v27, %v11_v0  ;;  %v50_v29 = vmul.f32 %v47_v27, %v12_v1 }
 0x1dd   :  { %v54_v30 = vpop.permute.xlu2 %53 }
 0x1de   :  { %v56_v31 = vadd.f32 %v54_v30, %v49_v28  ;;  %v57_v32 = vadd.f32 %v54_v30, %v50_v29 }
 0x1e0   :  { %58 = vst [vmem:[%s107_s2] sm:$0xff] %v56_v31 }
 0x1e1   :  { %59 = vst [vmem:[%s107_s2 + $0x8] sm:$0xff] %v57_v32 }

</bundles_post_ra>
